<compile_context>
chip_gen: v7x
topology: tpu7x:2x2x1
jax: 0.10.0
libtpu: 0.0.40
codegen_flags: <defaults>
</compile_context>

<pallas_src>
import functools

import jax
import jax.numpy as jnp
from jax.experimental import pallas as pl
from jax.experimental.pallas import tpu as pltpu


def _round_up(x, m):
    return ((x + m - 1) // m) * m


def scatter_sum_kernel(batch_ref, h_ref, partial_ref):
    """Per-graph feature-sum accumulation for one node tile.

    batch_ref   : (1, TN)     int32  graph id per node (padded nodes = G)
    h_ref       : (TN, D_tot) bf16   [features | 1 | 0-pad]  (ones col -> counts)
    partial_ref : (G, D_tot)  f32    per-core accumulator (output block,
                                     resident across the node-tile grid axis)
    """
    t = pl.program_id(1)

    @pl.when(t == 0)
    def _init():
        partial_ref[...] = jnp.zeros_like(partial_ref)

    bidx = batch_ref[...]                                        # (1, TN) int32
    g = partial_ref.shape[0]
    gids = jax.lax.broadcasted_iota(jnp.int32, (g, 1), 0)        # (G, 1)
    # Broadcast compare -> (G, TN) one-hot; padded nodes (id == G) give an
    # all-zero column.  0/1 is exact in bf16, accumulation stays f32.
    onehot = (gids == bidx).astype(jnp.bfloat16)
    partial_ref[...] += jnp.dot(onehot, h_ref[...],
                                preferred_element_type=jnp.float32)


def combine_mlp_kernel(partials_ref, w1_ref, b1_ref, w2_ref, b2_ref,
                       w3_ref, b3_ref, out_ref, *, d_feat):
    """Combine per-core partial sums -> per-graph mean -> 3-layer MLP."""
    sums = jnp.sum(partials_ref[...], axis=0)                    # (G, D_tot) f32
    counts = sums[:, d_feat:d_feat + 1]                          # ones column
    mean = sums / jnp.maximum(counts, 1.0)                       # exact divide

    a1 = jnp.dot(mean, w1_ref[...], preferred_element_type=jnp.float32) + b1_ref[...]
    a1 = jnp.maximum(a1, 0.0)
    a2 = jnp.dot(a1, w2_ref[...], preferred_element_type=jnp.float32) + b2_ref[...]
    a2 = jnp.maximum(a2, 0.0)
    out_ref[...] = (
        jnp.dot(a2, w3_ref[...], preferred_element_type=jnp.float32) + b3_ref[...]
    )


@functools.partial(jax.jit, static_argnames=("num_graphs", "tn"))
def faenet_feature_extractor(batch_idx, hidden_states, params, num_graphs, tn=None):
    """batch_idx: (N,) int; hidden_states: (N, D) float; returns (G, n_output) f32.

    tn is the node-tile size (rows per grid step, per core).  tn=None picks a
    bytes-based tile (~2 MiB of bf16 per buffer), which amortizes the ~0.35 us
    per-step pipeline overhead while keeping double-buffered tiles far below
    v7x's 64 MiB VMEM (and trivially below v5e/v6e's 128 MiB).
    """
    n_nodes, d = hidden_states.shape
    w1, b1, w2, b2, w3, b3 = params
    h1, h2, n_out = w1.shape[1], w2.shape[1], w3.shape[1]

    # Lane-dense augmented feature layout: [features | 1 | 0-pad] to a multiple
    # of 128 lanes (D=32 alone would waste 3/4 of every vreg row / DMA byte).
    d_aug = d + 1
    d_tot = _round_up(d_aug, 128)

    n_cores = 2  # node-axis "parallel" split: v7x's two TCs take one half each

    if tn is None:
        tile_target_bytes = 2 * 1024 * 1024          # ~2 MiB bf16 per buffer
        tn = max(1024, min(32768, tile_target_bytes // (2 * d_tot)))
    tn = max(128, (int(tn) // 128) * 128)
    # Don't over-pad tiny inputs with a huge tile.
    tn = min(tn, _round_up(pl.cdiv(n_nodes, n_cores), 128))

    t_per_core = pl.cdiv(n_nodes, n_cores * tn)
    n_pad = n_cores * t_per_core * tn
    pad_rows = n_pad - n_nodes

    # Pack hidden states: bf16, ones column at index d, zero-pad lanes & rows.
    h_bf16 = hidden_states.astype(jnp.bfloat16)
    h_aug = jnp.concatenate([h_bf16, jnp.ones((n_nodes, 1), jnp.bfloat16)], axis=1)
    h_aug = jnp.pad(h_aug, ((0, pad_rows), (0, d_tot - d_aug)))

    # Padded nodes get graph id == num_graphs -> all-zero one-hot column.
    batch_2d = jnp.pad(batch_idx.astype(jnp.int32), (0, pad_rows),
                       constant_values=num_graphs).reshape(1, n_pad)

    # ---- kernel 1: streaming per-graph scatter-sum (+ counts) -------------
    h_tile_bytes = tn * d_tot * 2
    # 2x double-buffered h tiles + batch tiles + accumulator + headroom,
    # capped at 48 MiB so the same kernel is safe on v7x's 64 MiB VMEM.
    vmem_limit = int(min(48 * 2**20, max(16 * 2**20, 4 * h_tile_bytes + 2 * 2**20)))

    cost1 = pl.CostEstimate(
        flops=2 * num_graphs * n_pad * d_tot,
        transcendentals=0,
        bytes_accessed=n_pad * d_tot * 2 + n_pad * 4
        + n_cores * num_graphs * d_tot * 4,
    )

    # NOTE: per-tile compute is negligible (pure DMA pipeline); if a VMEM cap
    # ever forces much smaller tiles, pipeline_mode=pl.Buffered(3) on the h
    # spec would be the next lever.
    partials = pl.pallas_call(
        scatter_sum_kernel,
        out_shape=jax.ShapeDtypeStruct((n_cores, num_graphs, d_tot), jnp.float32),
        grid_spec=pltpu.PrefetchScalarGridSpec(
            num_scalar_prefetch=0,
            grid=(n_cores, t_per_core),
            in_specs=[
                pl.BlockSpec((1, tn), lambda c, t: (0, c * t_per_core + t)),
                pl.BlockSpec((tn, d_tot), lambda c, t: (c * t_per_core + t, 0)),
            ],
            out_specs=pl.BlockSpec((None, num_graphs, d_tot),
                                   lambda c, t: (c, 0, 0)),
        ),
        compiler_params=pltpu.CompilerParams(
            dimension_semantics=("parallel", "arbitrary"),
            vmem_limit_bytes=vmem_limit,
        ),
        cost_estimate=cost1,
    )(batch_2d, h_aug)

    # ---- kernel 2: combine partials -> mean -> MLP (single tiny invocation)
    w1_p = jnp.pad(w1.astype(jnp.float32), ((0, d_tot - d), (0, 0)))  # ones-col
    b1_2d = b1.reshape(1, h1).astype(jnp.float32)                     # & pad rows
    w2_f = w2.astype(jnp.float32)                                     # are zero
    b2_2d = b2.reshape(1, h2).astype(jnp.float32)
    w3_f = w3.astype(jnp.float32)
    b3_2d = b3.reshape(1, n_out).astype(jnp.float32)

    return pl.pallas_call(
        functools.partial(combine_mlp_kernel, d_feat=d),
        out_shape=jax.ShapeDtypeStruct((num_graphs, n_out), jnp.float32),
    )(partials, w1_p, b1_2d, w2_f, b2_2d, w3_f, b3_2d)


def reference(batch_idx, hidden_states, params, num_graphs):
    """Pure-JAX reference (scatter-mean + MLP); hidden states rounded to bf16
    to mirror the kernel's documented streaming precision."""
    w1, b1, w2, b2, w3, b3 = params
    h = hidden_states.astype(jnp.bfloat16).astype(jnp.float32)
    onehot = (batch_idx[None, :] == jnp.arange(num_graphs)[:, None]).astype(jnp.float32)
    counts = onehot.sum(-1, keepdims=True)
    mean = (onehot @ h) / jnp.maximum(counts, 1.0)
    a1 = jax.nn.relu(mean @ w1 + b1)
    a2 = jax.nn.relu(a1 @ w2 + b2)
    return a2 @ w3 + b3


if __name__ == "__main__":
    key = jax.random.PRNGKey(0)

    # Small shapes consistent with the module: FAENet embed dim D, 2 graphs,
    # 600 nodes total (unevenly split), MLP hidden sizes [32, 64], 2 outputs.
    # tn=128 gives grid (2 cores, 3 node tiles per core), exercising init /
    # accumulation / node padding / both core slots.  Production uses the
    # bytes-based auto tile (tn=None), also checked below.
    N_NODES = 600
    D = 32            # FAENet embed_block.lin.out_features (synthetic)
    G = 2             # number of graphs in the Batch
    H1, H2 = 32, 64   # n_hidden
    N_OUT = 2         # n_output
    TN = 128

    k_h, k_w1, k_b1, k_w2, k_b2, k_w3, k_b3 = jax.random.split(key, 7)

    hidden_states = jax.random.normal(k_h, (N_NODES, D), dtype=jnp.float32)
    # Nodes 0..249 belong to graph 0, nodes 250..599 to graph 1.
    batch_idx = jnp.concatenate(
        [jnp.zeros((250,), jnp.int32), jnp.ones((N_NODES - 250,), jnp.int32)])

    params = (
        jax.random.normal(k_w1, (D, H1), dtype=jnp.float32) * 0.1,
        jax.random.normal(k_b1, (H1,), dtype=jnp.float32) * 0.01,
        jax.random.normal(k_w2, (H1, H2), dtype=jnp.float32) * 0.1,
        jax.random.normal(k_b2, (H2,), dtype=jnp.float32) * 0.01,
        jax.random.normal(k_w3, (H2, N_OUT), dtype=jnp.float32) * 0.1,
        jax.random.normal(k_b3, (N_OUT,), dtype=jnp.float32) * 0.01,
    )

    ref = reference(batch_idx, hidden_states, params, G)

    out = faenet_feature_extractor(batch_idx, hidden_states, params, G, tn=TN)
    out = jax.block_until_ready(out)
    assert out.shape == (G, N_OUT), out.shape
    assert jnp.allclose(out, ref, atol=2e-3, rtol=2e-3), (out, ref)

    # Auto (bytes-based) tile-size path.
    out_auto = faenet_feature_extractor(batch_idx, hidden_states, params, G)
    out_auto = jax.block_until_ready(out_auto)
    assert jnp.allclose(out_auto, ref, atol=2e-3, rtol=2e-3), (out_auto, ref)

    print("KERNEL_OK")
</pallas_src>

<mosaic_0001>
module attributes {stable_mosaic.version = 11 : i64} {
  func.func @scatter_sum_kernel(%arg0: i32, %arg1: i32, %arg2: memref<1x128xi32, #tpu.memory_space<vmem>>, %arg3: memref<128x128xbf16, #tpu.memory_space<vmem>>, %arg4: memref<1x2x128xf32, #tpu.memory_space<vmem>>) attributes {dimension_semantics = [#tpu.dimension_semantics<parallel>, #tpu.dimension_semantics<arbitrary>], iteration_bounds = array<i64: 2, 3>, scalar_prefetch = 0 : i64, scratch_operands = 0 : i64, tpu.core_type = #tpu.core_type<tc>, window_params = [{transform_indices = @transform_0, window_bounds = array<i64: 1, 128>}, {transform_indices = @transform_1, window_bounds = array<i64: 128, 128>}, {transform_indices = @transform_2, window_bounds = array<i64: 1, 2, 128>}]} {
    %c0_i32 = arith.constant 0 : i32
    %0 = arith.cmpi eq, %arg1, %c0_i32 : i32
    %1 = arith.extui %0 : i1 to i32
    %c0_i32_0 = arith.constant 0 : i32
    %2 = arith.cmpi ne, %1, %c0_i32_0 : i32
    scf.if %2 {
      %cst_10 = arith.constant 0.000000e+00 : f32
      %19 = vector.broadcast %cst_10 : f32 to vector<2x128xf32>
      %c0_11 = arith.constant 0 : index
      %c0_12 = arith.constant 0 : index
      %c0_13 = arith.constant 0 : index
      %20 = vector.load %arg4[%c0_11, %c0_12, %c0_13] : memref<1x2x128xf32, #tpu.memory_space<vmem>>, vector<1x2x128xf32>
      %21 = vector.shape_cast %20 : vector<1x2x128xf32> to vector<2x128xf32>
      %22 = vector.shape_cast %19 : vector<2x128xf32> to vector<1x2x128xf32>
      tpu.vector_store %arg4[%c0_11, %c0_12, %c0_13], %22 {strides = array<i32>} : memref<1x2x128xf32, #tpu.memory_space<vmem>>, vector<1x2x128xf32>,
    } else {
    }
    %c0 = arith.constant 0 : index
    %c0_1 = arith.constant 0 : index
    %3 = vector.load %arg2[%c0, %c0_1] : memref<1x128xi32, #tpu.memory_space<vmem>>, vector<1x128xi32>
    %4 = tpu.iota {dimensions = array<i32: 0>} : vector<2x1xi32>
    %5 = vector.broadcast %4 : vector<2x1xi32> to vector<2x128xi32>
    %6 = vector.broadcast %3 : vector<1x128xi32> to vector<2x128xi32>
    %7 = arith.cmpi eq, %5, %6 : vector<2x128xi32>
    %8 = arith.extui %7 : vector<2x128xi1> to vector<2x128xi32>
    %9 = arith.sitofp %8 : vector<2x128xi32> to vector<2x128xf32>
    %10 = arith.truncf %9 : vector<2x128xf32> to vector<2x128xbf16>
    %c0_2 = arith.constant 0 : index
    %c0_3 = arith.constant 0 : index
    %c0_4 = arith.constant 0 : index
    %11 = vector.load %arg4[%c0_2, %c0_3, %c0_4] : memref<1x2x128xf32, #tpu.memory_space<vmem>>, vector<1x2x128xf32>
    %12 = vector.shape_cast %11 : vector<1x2x128xf32> to vector<2x128xf32>
    %c0_5 = arith.constant 0 : index
    %c0_6 = arith.constant 0 : index
    %13 = vector.load %arg3[%c0_5, %c0_6] : memref<128x128xbf16, #tpu.memory_space<vmem>>, vector<128x128xbf16>
    %cst = arith.constant dense<0.000000e+00> : vector<2x128xf32>
    %14 = tpu.matmul %10, %13, %cst {dimension_numbers = #tpu.dot_dimension_numbers<[1], [0], [0], [1], [0, 0, 1, 1], [], []>} : vector<2x128xbf16>, vector<128x128xbf16>, vector<2x128xf32> -> vector<2x128xf32>
    %15 = arith.addf %12, %14 : vector<2x128xf32>
    %c0_7 = arith.constant 0 : index
    %c0_8 = arith.constant 0 : index
    %c0_9 = arith.constant 0 : index
    %16 = vector.load %arg4[%c0_7, %c0_8, %c0_9] : memref<1x2x128xf32, #tpu.memory_space<vmem>>, vector<1x2x128xf32>
    %17 = vector.shape_cast %16 : vector<1x2x128xf32> to vector<2x128xf32>
    %18 = vector.shape_cast %15 : vector<2x128xf32> to vector<1x2x128xf32>
    tpu.vector_store %arg4[%c0_7, %c0_8, %c0_9], %18 {strides = array<i32>} : memref<1x2x128xf32, #tpu.memory_space<vmem>>, vector<1x2x128xf32>,
    return
  }
  func.func @transform_0(%arg0: i32, %arg1: i32) -> (i32, i32) {
    %c3_i32 = arith.constant 3 : i32
    %0 = arith.muli %arg0, %c3_i32 : i32
    %1 = arith.addi %0, %arg1 : i32
    %c0_i32 = arith.constant 0 : i32
    %c0_i32_0 = arith.constant 0 : i32
    return %c0_i32, %1 : i32, i32
  }
  func.func @transform_1(%arg0: i32, %arg1: i32) -> (i32, i32) {
    %c3_i32 = arith.constant 3 : i32
    %0 = arith.muli %arg0, %c3_i32 : i32
    %1 = arith.addi %0, %arg1 : i32
    %c0_i32 = arith.constant 0 : i32
    %c0_i32_0 = arith.constant 0 : i32
    return %1, %c0_i32 : i32, i32
  }
  func.func @transform_2(%arg0: i32, %arg1: i32) -> (i32, i32, i32) {
    %c0_i32 = arith.constant 0 : i32
    %c0_i32_0 = arith.constant 0 : i32
    %c0_i32_1 = arith.constant 0 : i32
    return %arg0, %c0_i32, %c0_i32_0 : i32, i32, i32
  }
}

module attributes {stable_mosaic.version = 11 : i64} {
  func.func @combine_mlp_kernel(%arg0: memref<2x2x128xf32, #tpu.memory_space<vmem>>, %arg1: memref<128x32xf32, #tpu.memory_space<vmem>>, %arg2: memref<1x32xf32, #tpu.memory_space<vmem>>, %arg3: memref<32x64xf32, #tpu.memory_space<vmem>>, %arg4: memref<1x64xf32, #tpu.memory_space<vmem>>, %arg5: memref<64x2xf32, #tpu.memory_space<vmem>>, %arg6: memref<1x2xf32, #tpu.memory_space<vmem>>, %arg7: memref<2x2xf32, #tpu.memory_space<vmem>>) attributes {dimension_semantics = [], scalar_prefetch = 0 : i64, scratch_operands = 0 : i64, tpu.core_type = #tpu.core_type<tc>} {
    %c0 = arith.constant 0 : index
    %c0_0 = arith.constant 0 : index
    %c0_1 = arith.constant 0 : index
    %0 = vector.load %arg0[%c0, %c0_0, %c0_1] : memref<2x2x128xf32, #tpu.memory_space<vmem>>, vector<2x2x128xf32>
    %cst = arith.constant dense<0.000000e+00> : vector<2x128xf32>
    %1 = vector.multi_reduction <add>, %0, %cst [0] : vector<2x2x128xf32> to vector<2x128xf32>
    %2 = vector.extract_strided_slice %1 {offsets = [0, 32], sizes = [2, 1], strides = [1, 1]} : vector<2x128xf32> to vector<2x1xf32>
    %cst_2 = arith.constant 1.000000e+00 : f32
    %3 = vector.broadcast %cst_2 : f32 to vector<2x1xf32>
    %4 = arith.maximumf %2, %3 : vector<2x1xf32>
    %5 = vector.broadcast %4 : vector<2x1xf32> to vector<2x128xf32>
    %6 = arith.divf %1, %5 : vector<2x128xf32>
    %c0_3 = arith.constant 0 : index
    %c0_4 = arith.constant 0 : index
    %7 = vector.load %arg1[%c0_3, %c0_4] : memref<128x32xf32, #tpu.memory_space<vmem>>, vector<128x32xf32>
    %cst_5 = arith.constant dense<0.000000e+00> : vector<2x32xf32>
    %8 = tpu.matmul %6, %7, %cst_5 {dimension_numbers = #tpu.dot_dimension_numbers<[1], [0], [0], [1], [0, 0, 1, 1], [], []>} : vector<2x128xf32>, vector<128x32xf32>, vector<2x32xf32> -> vector<2x32xf32>
    %c0_6 = arith.constant 0 : index
    %c0_7 = arith.constant 0 : index
    %9 = vector.load %arg2[%c0_6, %c0_7] : memref<1x32xf32, #tpu.memory_space<vmem>>, vector<1x32xf32>
    %10 = vector.broadcast %9 : vector<1x32xf32> to vector<2x32xf32>
    %11 = arith.addf %8, %10 : vector<2x32xf32>
    %cst_8 = arith.constant 0.000000e+00 : f32
    %12 = vector.broadcast %cst_8 : f32 to vector<2x32xf32>
    %13 = arith.maximumf %11, %12 : vector<2x32xf32>
    %c0_9 = arith.constant 0 : index
    %c0_10 = arith.constant 0 : index
    %14 = vector.load %arg3[%c0_9, %c0_10] : memref<32x64xf32, #tpu.memory_space<vmem>>, vector<32x64xf32>
    %cst_11 = arith.constant dense<0.000000e+00> : vector<2x64xf32>
    %15 = tpu.matmul %13, %14, %cst_11 {dimension_numbers = #tpu.dot_dimension_numbers<[1], [0], [0], [1], [0, 0, 1, 1], [], []>} : vector<2x32xf32>, vector<32x64xf32>, vector<2x64xf32> -> vector<2x64xf32>
    %c0_12 = arith.constant 0 : index
    %c0_13 = arith.constant 0 : index
    %16 = vector.load %arg4[%c0_12, %c0_13] : memref<1x64xf32, #tpu.memory_space<vmem>>, vector<1x64xf32>
    %17 = vector.broadcast %16 : vector<1x64xf32> to vector<2x64xf32>
    %18 = arith.addf %15, %17 : vector<2x64xf32>
    %cst_14 = arith.constant 0.000000e+00 : f32
    %19 = vector.broadcast %cst_14 : f32 to vector<2x64xf32>
    %20 = arith.maximumf %18, %19 : vector<2x64xf32>
    %c0_15 = arith.constant 0 : index
    %c0_16 = arith.constant 0 : index
    %21 = vector.load %arg5[%c0_15, %c0_16] : memref<64x2xf32, #tpu.memory_space<vmem>>, vector<64x2xf32>
    %cst_17 = arith.constant dense<0.000000e+00> : vector<2x2xf32>
    %22 = tpu.matmul %20, %21, %cst_17 {dimension_numbers = #tpu.dot_dimension_numbers<[1], [0], [0], [1], [0, 0, 1, 1], [], []>} : vector<2x64xf32>, vector<64x2xf32>, vector<2x2xf32> -> vector<2x2xf32>
    %c0_18 = arith.constant 0 : index
    %c0_19 = arith.constant 0 : index
    %23 = vector.load %arg6[%c0_18, %c0_19] : memref<1x2xf32, #tpu.memory_space<vmem>>, vector<1x2xf32>
    %24 = vector.broadcast %23 : vector<1x2xf32> to vector<2x2xf32>
    %25 = arith.addf %22, %24 : vector<2x2xf32>
    %c0_20 = arith.constant 0 : index
    %c0_21 = arith.constant 0 : index
    %26 = vector.load %arg7[%c0_20, %c0_21] : memref<2x2xf32, #tpu.memory_space<vmem>>, vector<2x2xf32>
    tpu.vector_store %arg7[%c0_20, %c0_21], %25 {strides = array<i32>} : memref<2x2xf32, #tpu.memory_space<vmem>>, vector<2x2xf32>,
    return
  }
}

</mosaic_0001>

<bundles_post_ra>
// kernel: faenet_feature_extractor.3
= control target key start
LH: loop header
LB: loop body
LE: loop exit
PB: predicated region body
PF: predicated region fallthrough
CT: control target
= control target key end

     0   :  { %vm29_vm0 = vcmask 1041408   ;;  %v501_v2 = vmov 32   ;;  %v502_v9 = vmov 0.0|0.0   ;;  %s674_s0 = inlined_call_operand.vmem [shape: f32[2,2,128], index: 0, kind: input, shape index: {}]   ;;  %s675_s1 = inlined_call_operand.vmem [shape: f32[128,32], index: 1, kind: input, shape index: {}]   ;;  %s676_s2 = inlined_call_operand.vmem [shape: f32[1,32], index: 2, kind: input, shape index: {}]   ;;  %s677_s3 = inlined_call_operand.vmem [shape: f32[32,64], index: 3, kind: input, shape index: {}]   ;;  %s678_s4 = inlined_call_operand.vmem [shape: f32[1,64], index: 4, kind: input, shape index: {}]   ;;  %s679_s5 = inlined_call_operand.vmem [shape: f32[64,2], index: 5, kind: input, shape index: {}]   ;;  %s680_s6 = inlined_call_operand.vmem [shape: f32[1,2], index: 6, kind: input, shape index: {}]   ;;  %s681_s7 = inlined_call_operand.hbm [shape: f32[2,2], index: 7, kind: output, shape index: {}]  }
   0x1   :  { %v27_v0 = vld [vmem:[%s674_s0] sm:$0x3]  ;;  %v28_v1 = vld [vmem:[%s674_s0 + $0x2] sm:$0x3]  ;;  %474 = vset.pattern.permute.xlu0 %v501_v2  ;;  %v42_v6 = vld [vmem:[%s675_s1 + $0x8] sm:$0xff]  ;;  %427 = vmatprep.subr.bf16.mxu0 %v502_v9 }
   0x2   :  { %v30_v3 = vsel %vm29_vm0, %v27_v0, 0.0  ;;  %v31_v4 = vsel %vm29_vm0, %v28_v1, 0.0  ;;  %v41_v5 = vld [vmem:[%s675_s1] sm:$0xff]  ;;  %v43_v7 = vld [vmem:[%s675_s1 + $0x10] sm:$0xff]  ;;  %v44_v11 = vld [vmem:[%s675_s1 + $0x18] sm:$0xff]  ;;  %451 = vmatprep.subr.bf16.mxu1 %v502_v9 }
   0x3   :  { %v32_v8 = vadd.f32 %v31_v4, %v30_v3  ;;  %v428_v10 = vpack.c.bf16 %v42_v6, %v41_v5  ;;  %v431_v13 = vpack.c.bf16 %v44_v11, %v43_v7 }
   0x5   :  { %v33_v12 = vmax.f32 %v32_v8, 1.0  ;;  %429 = vmatpush3.bf16.msra.mxu0 %v428_v10 }
   0x6   :  { %12 = vsyncpa [#allocation3], 0  ;;  %430 = vmatprep.subr.bf16.mxu0 %v502_v9  ;;  %v45_v14 = vld [vmem:[%s675_s1 + $0x20] sm:$0xff]  ;;  %v46_v15 = vld [vmem:[%s675_s1 + $0x28] sm:$0xff]  ;;  %vm503_vm1 = vmmov 0   ;;  %v504_v16 = vmov 0.0  }
   0x7   :  { %36 = vperm.xlu0 %474, %v33_v12   ;;  %394 = vmatprep.mubr.msk.f32.mxu0 %vm503_vm1, %v504_v16  ;;  %v434_v17 = vpack.c.bf16 %v46_v15, %v45_v14  ;;  %v47_v18 = vld [vmem:[%s675_s1 + $0x30] sm:$0xff]  ;;  %v48_v19 = vld [vmem:[%s675_s1 + $0x38] sm:$0xff]  ;;  %v49_v21 = vld [vmem:[%s675_s1 + $0x40] sm:$0xff]  ;;  %vm146_vm2 = vcmask 261120   ;;  %vm236_vm3 = vcmask 523264   ;;  %s505_s15 = smov [#allocation2]  }
   0x8   :  { %405 = vmatprep.mubr.msk.f32.mxu1 %vm503_vm1, %v504_v16  ;;  %v437_v20 = vpack.c.bf16 %v48_v19, %v47_v18  ;;  %v50_v22 = vld [vmem:[%s675_s1 + $0x48] sm:$0xff]  ;;  %v51_v24 = vld [vmem:[%s675_s1 + $0x50] sm:$0xff]  ;;  %v52_v25 = vld [vmem:[%s675_s1 + $0x58] sm:$0xff]  ;;  %s318_s16 = sshll.u32 %s505_s15, 4  ;;  %vm310_vm4 = vcmask 9216   ;;  %s319_s16 = int_to_ptr.vmem [resolvable:$true] %s318_s16 }
   0x9   :  { %432 = vmatpush3.bf16.msra.mxu0 %v431_v13  ;;  %v440_v23 = vpack.c.bf16 %v50_v22, %v49_v21  ;;  %v135_v26 = vld [vmem:[%s677_s3] sm:$0xff]  ;;  %v136_v27 = vld [vmem:[%s677_s3 + $0x8] sm:$0xff]  ;;  %v443_v28 = vpack.c.bf16 %v52_v25, %v51_v24  ;;  %v55_v33 = vld [vmem:[%s675_s1 + $0x70] sm:$0xff]  ;;  %p482_p1 = scmp.lt.s32.totalorder %s319_s16, %s319_s16 }
   0xa   :  { %433 = vmatprep.subr.bf16.mxu0 %v502_v9  ;;  %v452_v29 = vpack.c.bf16 %v136_v27, %v135_v26  ;;  %v53_v30 = vld [vmem:[%s675_s1 + $0x60] sm:$0xff]  ;;  %v54_v31 = vld [vmem:[%s675_s1 + $0x68] sm:$0xff]  ;;  %v56_v34 = vld [vmem:[%s675_s1 + $0x78] sm:$0xff] }
   0xb   :  { %v446_v32 = vpack.c.bf16 %v54_v31, %v53_v30  ;;  %v449_v35 = vpack.c.bf16 %v56_v34, %v55_v33  ;;  %v137_v39 = vld [vmem:[%s677_s3 + $0x10] sm:$0xff]  ;;  %v138_v40 = vld [vmem:[%s677_s3 + $0x18] sm:$0xff]  ;;  %v326_v42 = vld [vmem:[%s676_s2] ss:$0 sm:$0xff] }
   0xc   :  { %453 = vmatpush3.bf16.msra.mxu1 %v452_v29  ;;  %v455_v41 = vpack.c.bf16 %v138_v40, %v137_v39  ;;  %v221_v43 = vld [vmem:[%s679_s5] sm:$0xff]  ;;  %v222_v44 = vld [vmem:[%s679_s5 + $0x8] sm:$0xff]  ;;  %v223_v50 = vld [vmem:[%s679_s5 + $0x10] sm:$0xff] }
   0xd   :  { %435 = vmatpush3.bf16.msra.mxu0 %v434_v17  ;;  %454 = vmatprep.subr.bf16.mxu1 %v502_v9  ;;  %v458_v48 = vpack.c.bf16 %v222_v44, %v221_v43  ;;  %v224_v51 = vld [vmem:[%s679_s5 + $0x18] sm:$0xff]  ;;  %v225_v53 = vld [vmem:[%s679_s5 + $0x20] sm:$0xff]  ;;  %v226_v54 = vld [vmem:[%s679_s5 + $0x28] sm:$0xff] }
   0xe   :  { %436 = vmatprep.subr.bf16.mxu0 %v502_v9  ;;  %v461_v52 = vpack.c.bf16 %v224_v51, %v223_v50  ;;  %v464_v55 = vpack.c.bf16 %v226_v54, %v225_v53  ;;  %v227_v56 = vld [vmem:[%s679_s5 + $0x30] sm:$0xff]  ;;  %v228_v57 = vld [vmem:[%s679_s5 + $0x38] sm:$0xff]  ;;  %v327_v59 = vld [vmem:[%s678_s4] ss:$0 sm:$0xff]  ;;  %s477_s5 = scalar_lea.vmem %s319_s16, 32 }
   0xf   :  { %v467_v58 = vpack.c.bf16 %v228_v57, %v227_v56  ;;  %v329_v0 = vld [vmem:[%s680_s6] ss:$0 sm:$0xff]  ;;  %p478_p0 = scmp.ne.s32.totalorder %s319_s16, %s477_s5  ;;  %p483_p2 = scmp.lt.s32.totalorder %s477_s5, %s477_s5 }
  0x10   :  { %456 = vmatpush3.bf16.msra.mxu1 %v455_v41 }
  0x11   :  { %438 = vmatpush3.bf16.msra.mxu0 %v437_v20  ;;  %457 = vmatprep.subr.bf16.mxu1 %v502_v9  ;;  %p484_p3 = por %p483_p2, %p482_p1 }
  0x12   :  { %439 = vmatprep.subr.bf16.mxu0 %v502_v9 }
  0x13   :  { %p485_p4 = pnand %p484_p3, %p478_p0 }
  0x15   :  { %441 = vmatpush3.bf16.msra.mxu0 %v440_v23 }
  0x16   :  { %442 = vmatprep.subr.bf16.mxu0 %v502_v9 }
  0x19   :  { %444 = vmatpush3.bf16.msra.mxu0 %v443_v28 }
  0x1a   :  { %445 = vmatprep.subr.bf16.mxu0 %v502_v9 }
  0x1d   :  { %447 = vmatpush3.bf16.msra.mxu0 %v446_v32 }
  0x1e   :  { %448 = vmatprep.subr.bf16.mxu0 %v502_v9 }
  0x21   :  { %450 = vmatpush3.bf16.msra.mxu0 %v449_v35 }
  0x86   :  { %v37_v36 = vpop.permute.xlu0 %36 }
  0x87   :  { %475 = vrcp.f32 %v37_v36 }
  0x91   :  { %v476_v37 = vpop.eup %475 }
  0x92   :  { %v40_v38 = vmul.f32 %v476_v37, %v32_v8 }
  0x94   :  { %395 = vmatmul.mubr.f32.vlgmr.msra.gmra.mrb[0].mxu0 %v40_v38 }
 0x167   :  { %v130_v45 = vpop.f32.mrb[0].mxu0 }
 0x168   :  { %v131_v46 = vadd.f32 %v326_v42, %v130_v45  ;;  %v396_v47 = vpop.f32.mrb[1].mxu0 }
 0x16a   :  { %v134_v49 = vmax.f32 %v131_v46, 0.0 }
 0x16c   :  { %406 = vmatmul.mubr.msk.f32.vlgmr.msra.gmra.mrb[0].mxu1 %vm146_vm2, %v134_v49 }
 0x16d   :  { %459 = vmatpush3.bf16.msra.mxu1 %v458_v48  ;;  %424 = vmatprep.mubr.msk.f32.mxu1 %vm503_vm1, %v504_v16 }
 0x16e   :  { %460 = vmatprep.subr.bf16.mxu1 %v502_v9 }
 0x171   :  { %462 = vmatpush3.bf16.msra.mxu1 %v461_v52 }
 0x172   :  { %463 = vmatprep.subr.bf16.mxu1 %v502_v9 }
 0x175   :  { %465 = vmatpush3.bf16.msra.mxu1 %v464_v55 }
 0x176   :  { %466 = vmatprep.subr.bf16.mxu1 %v502_v9 }
 0x179   :  { %468 = vmatpush3.bf16.msra.mxu1 %v467_v58 }
 0x23f   :  { %v216_v60 = vpop.f32.mrb[0].mxu1 }
 0x240   :  { %v217_v61 = vadd.f32 %v327_v59, %v216_v60  ;;  %v407_v62 = vpop.f32.mrb[1].mxu1 }
 0x242   :  { %v220_v63 = vmax.f32 %v217_v61, 0.0 }
 0x244   :  { %425 = vmatmul.mubr.msk.f32.vlgmr.msra.gmra.mrb[2].mxu1 %vm236_vm3, %v220_v63 }
 0x317   :  { %v306_v1 = vpop.f32.mrb[2].mxu1 }
 0x318   :  { %v307_v2 = vadd.f32 %v329_v0, %v306_v1  ;;  %v426_v3 = vpop.f32.mrb[3].mxu1 }
 0x31a   :  { %311 = vst.msk [vmem:[#allocation2] sm:$0x3] %vm310_vm4, %v307_v2 }
 0x31b   :  { %488 = shalt.err (!%p485_p4)
}
 0x31c   :  { %s489_s18 = scalar_lea.hbm %s681_s7, 32 }
 0x31d   :  { %p490_p5 = scmp.ne.s32.totalorder %s681_s7, %s489_s18  ;;  %p493_p6 = scmp.lt.u32.totalorder %s489_s18, %s681_s7 }
 0x31f   :  { %p495_p7 = pnand %p493_p6, %p490_p5 }
 0x321   :  { %498 = shalt.err (!%p495_p7)
}
 0x322   :  { %321 = dma.vmem_to_hbm [thread:$0]  %s319_s16, 32, %s681_s7, [#allocation3]  }
 0x323   :  { %499 = dma.done.wait [#allocation3], 32  }
 0x324   :  { %500 = vsyncadd [#allocation3], 4294967264 }
 0x325   :  { %325 = vsyncpa [#allocation3], 1 }

// kernel: faenet_feature_extractor.2
= control target key start
LH: loop header
LB: loop body
LE: loop exit
PB: predicated region body
PF: predicated region fallthrough
CT: control target
= control target key end

     0   :  { %s558_s9 = smov 0   ;;  %s560_s10 = smov 0   ;;  %s639_s0 = inlined_call_operand.vmem [shape: s32[1,768], index: 0, kind: input, shape index: {}]   ;;  %s640_s1 = inlined_call_operand.vmem [shape: bf16[768,128], index: 1, kind: input, shape index: {}]   ;;  %s641_s2 = inlined_call_operand.vmem [shape: f32[2,2,128], index: 2, kind: output, shape index: {}]  }
   0x1   :  { %s562_s11 = smov 0   ;;  %s564_s12 = smov 0  }
   0x2   :  { %s566_s13 = smov 0  }
   0x3 LB: > { %s21_s14 = sadd.s32 1, %s529_s11  ;;  %s24_s15 = sadd.s32 1, %s533_s12  ;;  %s537_s13 = sphi %s566_s13, %s12_s13   ;;  %s533_s12 = sphi %s564_s12, %s645_s12   ;;  %s529_s11 = sphi %s562_s11, %s644_s11   ;;  %s525_s10 = sphi %s560_s10, %s643_s10   ;;  %s521_s9 = sphi %s558_s9, %s642_s9  }
   0x4   : > { %p22_p0 = scmp.ge.s32.totalorder %s21_s14, 3  ;;  %p399_p1 = scmp.ge.s32.totalorder %s537_s13, 1 }
   0x5   : > { %p149_p2 = scmp.lt.s32.totalorder %s537_s13, 7 }
   0x6   : > { %s647_s14 = smov (%p22_p0, %s21_s14), 0  ;;  %s649_s15 = smov (!%p22_p0, %s24_s15), %s533_s12 }
   0x7   : > { %p150_p3 = pnand %p399_p1, %p149_p2  ;;  %p26_p4 = scmp.ge.s32.totalorder %s649_s15, 2 }
   0x8   : > { %s177_s16 = smul.u32 (!%p150_p3), 3, %s525_s10  ;;  %p194_p7 = scmp.lt.s32.totalorder (!%p150_p3), %s525_s10, 1 }
   0x9   : > { %s651_s15 = smov (%p26_p4, %s649_s15), 0  ;;  %153 = sbr.rel (%p150_p3) target bundleno = 274 (0x112), region = 28 }
   0xa   : > { %s178_s17 = sadd.s32 (!%p150_p3), %s521_s9, %s177_s16  ;;  %p403_p8 = scmp.ne.s32.totalorder (!%p150_p3), %s521_s9, 0 }
   0xb   : > { %p179_p5 = scmp.lt.s32.totalorder (!%p150_p3), %s178_s17, 5  ;;  %s400_s18 = sshll.u32 (!%p150_p3), %s178_s17, 4 }
   0xc   : > { %p187_p6 = scmp.lt.s32.totalorder (!%p150_p3), %s400_s18, 95 }
  0x10   : > { %s653_s17 = smov (!%p179_p5, %s178_s17), 5  ;;  %s655_s18 = smov (!%p187_p6, %s400_s18), 95 }
  0x11   : > { %s181_s21 = scalar_lea.vmem %s639_s0, %s653_s17  ;;  %s401_s22 = sshll.u32 %s655_s18, 2  ;;  %v539_v0 = vmov (!%p403_p8), 0.0  }
  0x12   : > { %s600_s25 = scalar_lea.vmem %s640_s1, %s401_s22  ;;  %s657_s10 = smov (!%p194_p7, %s525_s10), 1 }
  0x13   : > { %s402_s26 = sshll.u32 %s657_s10, 1  ;;  %202 = sbr.rel (%p403_p8) target bundleno = 26 (0x1a), region = 32 }
  0x14   : > { %s605_s29 = scalar_lea.vmem %s641_s2, %s402_s26 }
  0x15   : > { %203 = vst [vmem:[%s605_s29] sm:$0x3] (!%p403_p8), %v539_v0 }
  0x1a PF: > { %v491_v1 = vld [vmem:[%s600_s25] sm:$0xff]   ;;  %v540_v2 = vmov 0.0   ;;  %v492_v3 = vld [vmem:[%s600_s25 + $0x8] sm:$0xff]   ;;  %vm541_vm0 = vmmov 0   ;;  %v493_v4 = vld [vmem:[%s600_s25 + $0x10] sm:$0xff]   ;;  %v205_v8 = vlaneseq }
  0x1b   : > { %427 = vmatprep.subr.bf16.mxu0 %v540_v2  ;;  %443 = vmatprep.mubr.msk.bf16.mxu0 %vm541_vm0, %v540_v2  ;;  %v494_v5 = vld [vmem:[%s600_s25 + $0x18] sm:$0xff]   ;;  %v495_v6 = vld [vmem:[%s600_s25 + $0x20] sm:$0xff]   ;;  %v496_v7 = vld [vmem:[%s600_s25 + $0x28] sm:$0xff]   ;;  %v542_v13 = vmov 1.0|1.0  }
  0x1c   : > { %428 = vmatpush3.bf16.msra.mxu0 %v491_v1  ;;  %v497_v9 = vld [vmem:[%s600_s25 + $0x30] sm:$0xff]   ;;  %v206_v10 = vshrl.u32 %v205_v8, 7  ;;  %v404_v11 = vld [vmem:[%s181_s21] ss:$0 sm:$0xff]  ;;  %v498_v12 = vld [vmem:[%s600_s25 + $0x38] sm:$0xff]  }
  0x1d   : > { %429 = vmatprep.subr.bf16.mxu0 %v540_v2  ;;  %v215_v14 = vld [vmem:[%s605_s29] sm:$0x3] }
  0x1e   : > { %vm211_vm1 = vcmp.eq.s32.totalorder %v206_v10, %v404_v11 }
  0x1f   : > { %vm414_vm2 = vmpackc.low %vm211_vm1, %vm211_vm1 }
  0x20   : > { %430 = vmatpush3.bf16.msra.mxu0 %v492_v3 }
  0x21   : > { %431 = vmatprep.subr.bf16.mxu0 %v540_v2 }
  0x24   : > { %432 = vmatpush3.bf16.msra.mxu0 %v493_v4 }
  0x25   : > { %433 = vmatprep.subr.bf16.mxu0 %v540_v2 }
  0x28   : > { %434 = vmatpush3.bf16.msra.mxu0 %v494_v5 }
  0x29   : > { %435 = vmatprep.subr.bf16.mxu0 %v540_v2 }
  0x2c   : > { %436 = vmatpush3.bf16.msra.mxu0 %v495_v6 }
  0x2d   : > { %437 = vmatprep.subr.bf16.mxu0 %v540_v2 }
  0x30   : > { %438 = vmatpush3.bf16.msra.mxu0 %v496_v7 }
  0x31   : > { %439 = vmatprep.subr.bf16.mxu0 %v540_v2 }
  0x34   : > { %440 = vmatpush3.bf16.msra.mxu0 %v497_v9 }
  0x35   : > { %441 = vmatprep.subr.bf16.mxu0 %v540_v2 }
  0x38   : > { %442 = vmatpush3.bf16.msra.mxu0 %v498_v12 }
  0x3b   : > { %444 = vmatmul.mubr.msk.bf16.vlgmr.msra.gmra.mrb[0].mxu0 %vm414_vm2, %v542_v13 }
 0x10e   : > { %v314_v15 = vpop.f32.mrb[0].mxu0 }
 0x10f   : > { %v320_v16 = vadd.f32 %v314_v15, %v215_v14  ;;  %v445_v17 = vpop.f32.mrb[1].mxu0 }
 0x110   : > { %v317_v18 = vpop.f32.mrb[2].mxu0 }
 0x111   : > { %321 = vst [vmem:[%s605_s29] sm:$0x3] %v320_v16  ;;  %v446_v19 = vpop.f32.mrb[3].mxu0 }
 0x112 PF: > { %s12_s13 = sadd.s32 1, %s537_s13   ;;  %s642_s9 = smov %s529_s11 }
 0x113   : > { %p9_p9 = scmp.ge.s32.totalorder %s12_s13, 8   ;;  %s643_s10 = smov %s533_s12 }
 0x114   : > { %s644_s11 = smov %s647_s14  ;;  %s645_s12 = smov %s651_s15 }
 0x115   :  { %11 = sbr.rel (!%p9_p9) target bundleno = 3 (0x3), region = 65 }

</bundles_post_ra>
